<compile_context>
chip_gen: v6e
topology: v6e:2x2x1
jax: 0.10.0
libtpu: 0.0.40
codegen_flags: <defaults>
</compile_context>

<pallas_src>
import functools

import jax
import jax.numpy as jnp
from jax.experimental import pallas as pl
from jax.experimental.pallas import tpu as pltpu

HEAD_WIDTH = 128  # lane-dense padded head output width


def _round_up(x, m):
    return ((x + m - 1) // m) * m


# ---------------------------------------------------------------------------
# Kernel
# ---------------------------------------------------------------------------
def dueling_dqn_kernel(
    x_ref,
    w1_ref, b1_ref,
    w2_ref, b2_ref,
    ws_ref, bs_ref,
    wh_ref, bh_ref,
    out_ref,
):
    # In-kernel cast: x arrives as f32, goes to bf16 for the MXU (free VPU pass).
    x = x_ref[...].astype(jnp.bfloat16)  # (TILE_B, num_inputs)

    # fc1 + ReLU
    h = jnp.dot(x, w1_ref[...], preferred_element_type=jnp.float32) + b1_ref[...]
    h = jnp.maximum(h, 0.0).astype(jnp.bfloat16)

    # fc2 + ReLU
    h = jnp.dot(h, w2_ref[...], preferred_element_type=jnp.float32) + b2_ref[...]
    h = jnp.maximum(h, 0.0).astype(jnp.bfloat16)

    # fused value_fc | advantage_fc (one 128-lane matmul) + ReLU
    s = jnp.dot(h, ws_ref[...], preferred_element_type=jnp.float32) + bs_ref[...]
    s = jnp.maximum(s, 0.0).astype(jnp.bfloat16)

    # fused block head: columns [0, num_actions) already hold
    # q = v + (a - mean(a)) because the mean-subtraction is folded into the
    # packed weights; remaining columns are zero padding (lane-dense store).
    q = jnp.dot(s, wh_ref[...], preferred_element_type=jnp.float32) + bh_ref[...]
    out_ref[...] = q.astype(out_ref.dtype)  # bf16 store: halves HBM writeback


# ---------------------------------------------------------------------------
# Parameter init / packing (PyTorch-Linear semantics, one-time cost)
# ---------------------------------------------------------------------------
def init_params(key, num_inputs, num_actions):
    """PyTorch-Linear-style init (uniform +-1/sqrt(fan_in)), f32 masters.

    Weights stored as (in_features, out_features); biases as (1, out_features).
    """
    def linear(key, fan_in, fan_out):
        kw, kb = jax.random.split(key)
        bound = 1.0 / jnp.sqrt(jnp.float32(fan_in))
        w = jax.random.uniform(kw, (fan_in, fan_out), jnp.float32, -bound, bound)
        b = jax.random.uniform(kb, (1, fan_out), jnp.float32, -bound, bound)
        return w, b

    keys = jax.random.split(key, 6)
    w1, b1 = linear(keys[0], num_inputs, 128)
    w2, b2 = linear(keys[1], 128, 128)
    wv1, bv1 = linear(keys[2], 128, 64)
    wv2, bv2 = linear(keys[3], 64, 1)
    wa1, ba1 = linear(keys[4], 128, 64)
    wa2, ba2 = linear(keys[5], 64, num_actions)
    return dict(
        w1=w1, b1=b1, w2=w2, b2=b2,
        wv1=wv1, bv1=bv1, wv2=wv2, bv2=bv2,
        wa1=wa1, ba1=ba1, wa2=wa2, ba2=ba2,
    )


def pack_params(p, num_actions, head_width=HEAD_WIDTH):
    """One-time weight packing / fusion done in f32, then cast to bf16.

    NOTE: the bf16 cast of the packed head slightly breaks the exact
    zero-column-mean property of the folded mean-subtraction; the deviation is
    bf16-rounding-sized and covered by the tolerances below.
    """
    assert num_actions <= head_width, "num_actions must fit in the padded head"

    # Fused stream layer: columns [0:64) value stream, [64:128) advantage stream.
    ws = jnp.concatenate([p["wv1"], p["wa1"]], axis=1)   # (128, 128)
    bs = jnp.concatenate([p["bv1"], p["ba1"]], axis=1)   # (1, 128)

    # Fold the dueling mean-subtraction into the advantage head:
    #   a - mean(a) = s_a @ (wa2 - mean_cols(wa2)) + (ba2 - mean(ba2))
    wa2_c = p["wa2"] - jnp.mean(p["wa2"], axis=1, keepdims=True)   # (64, A)
    ba2_c = p["ba2"] - jnp.mean(p["ba2"], axis=1, keepdims=True)   # (1, A)

    # Fused block head (128, head_width):
    #   rows 0:64   -> value head, broadcast across the action columns
    #   rows 64:128 -> mean-centered advantage head
    #   remaining columns -> zero padding (lane-dense output)
    wh = jnp.zeros((128, head_width), jnp.float32)
    wh = wh.at[:64, :num_actions].set(jnp.broadcast_to(p["wv2"], (64, num_actions)))
    wh = wh.at[64:, :num_actions].set(wa2_c)
    bh = jnp.zeros((1, head_width), jnp.float32)
    bh = bh.at[0, :num_actions].set(p["bv2"][0, 0] + ba2_c[0])

    return dict(
        w1=p["w1"].astype(jnp.bfloat16), b1=p["b1"],
        w2=p["w2"].astype(jnp.bfloat16), b2=p["b2"],
        ws=ws.astype(jnp.bfloat16), bs=bs,
        wh=wh.astype(jnp.bfloat16), bh=bh,
    )


# ---------------------------------------------------------------------------
# Wrapper
# ---------------------------------------------------------------------------
def _choose_tiling(batch, max_tile=1024):
    """Pick (tile_b, b_pad): 16-row-aligned tiles, >=2 grid steps when possible
    (v7x megacore), tile sized to the batch so padding stays small."""
    b16 = _round_up(max(batch, 1), 16)
    if b16 <= 16:
        return 16, 16                       # tiny act()-style batch: one step
    n_tiles = max(2, pl.cdiv(b16, max_tile))
    tile_b = _round_up(pl.cdiv(b16, n_tiles), 16)
    b_pad = _round_up(b16, tile_b)
    return tile_b, b_pad


def _forward_padded(x, packed, max_tile):
    """Returns the padded (b_pad, HEAD_WIDTH) bf16 Q slab."""
    batch, num_inputs = x.shape
    head_width = packed["wh"].shape[1]

    tile_b, b_pad = _choose_tiling(batch, max_tile)
    if b_pad != batch:
        x = jnp.pad(x, ((0, b_pad - batch), (0, 0)))   # cheap; f32 pad only

    grid = (b_pad // tile_b,)

    def resident(shape):
        # Whole-array block, same block index every grid step -> stays in VMEM.
        return pl.BlockSpec(shape, lambda i: (0, 0))

    args = (
        x,
        packed["w1"], packed["b1"],
        packed["w2"], packed["b2"],
        packed["ws"], packed["bs"],
        packed["wh"], packed["bh"],
    )
    in_specs = [pl.BlockSpec((tile_b, num_inputs), lambda i: (i, 0))]
    in_specs += [resident(a.shape) for a in args[1:]]

    weight_bytes = sum(int(a.size) * a.dtype.itemsize for a in args[1:])
    cost = pl.CostEstimate(
        flops=2 * b_pad * (num_inputs * 128 + 3 * 128 * 128),
        transcendentals=0,
        bytes_accessed=int(b_pad * num_inputs * 4        # x read (f32)
                           + b_pad * head_width * 2      # q write (bf16)
                           + weight_bytes),
    )

    return pl.pallas_call(
        dueling_dqn_kernel,
        out_shape=jax.ShapeDtypeStruct((b_pad, head_width), jnp.bfloat16),
        grid=grid,
        in_specs=in_specs,
        out_specs=pl.BlockSpec((tile_b, head_width), lambda i: (i, 0)),
        compiler_params=pltpu.CompilerParams(
            dimension_semantics=("parallel",),   # batch tiles across v7x's 2 TCs
        ),
        cost_estimate=cost,
    )(*args)


@functools.partial(jax.jit, static_argnames=("max_tile",))
def dueling_dqn_forward_padded(x, packed, max_tile=1024):
    """Fast path: returns padded (b_pad, 128) bf16 Q; consume directly
    (argmax / gather over the first num_actions lanes) to avoid any slice."""
    return _forward_padded(x, packed, max_tile)


@functools.partial(jax.jit, static_argnames=("num_actions", "max_tile"))
def dueling_dqn_forward(x, packed, num_actions, max_tile=1024):
    """Module-semantics path: x (batch, num_inputs) f32 -> (batch, num_actions) f32."""
    q_pad = _forward_padded(x, packed, max_tile)
    # Layout plumbing only (bf16 now, so half the bytes of the old f32 slice).
    return q_pad[: x.shape[0], :num_actions].astype(jnp.float32)


# ---------------------------------------------------------------------------
# References for correctness checks
# ---------------------------------------------------------------------------
def reference_forward_f32(x, p):
    """Pure-f32 reference mirroring the PyTorch module exactly."""
    h = jax.nn.relu(x @ p["w1"] + p["b1"])
    h = jax.nn.relu(h @ p["w2"] + p["b2"])
    v = jax.nn.relu(h @ p["wv1"] + p["bv1"]) @ p["wv2"] + p["bv2"]
    a = jax.nn.relu(h @ p["wa1"] + p["ba1"]) @ p["wa2"] + p["ba2"]
    return v + (a - a.mean(axis=1, keepdims=True))


def reference_forward_packed(x, pp, num_actions):
    """Pure-JAX version of the exact math the kernel performs (bf16 weights,
    bf16 activations between layers, bf16 final store)."""
    xb = x.astype(jnp.bfloat16)
    h = jax.nn.relu(jnp.dot(xb, pp["w1"], preferred_element_type=jnp.float32) + pp["b1"])
    h = jax.nn.relu(jnp.dot(h.astype(jnp.bfloat16), pp["w2"],
                            preferred_element_type=jnp.float32) + pp["b2"])
    s = jax.nn.relu(jnp.dot(h.astype(jnp.bfloat16), pp["ws"],
                            preferred_element_type=jnp.float32) + pp["bs"])
    q = jnp.dot(s.astype(jnp.bfloat16), pp["wh"],
                preferred_element_type=jnp.float32) + pp["bh"]
    q = q.astype(jnp.bfloat16).astype(jnp.float32)   # match bf16 output store
    return q[:, :num_actions]


if __name__ == "__main__":
    num_inputs = 32
    num_actions = 4

    key = jax.random.PRNGKey(0)
    k_params, k_x1, k_x2 = jax.random.split(key, 3)
    params = init_params(k_params, num_inputs, num_actions)
    packed = pack_params(params, num_actions)

    # --- small act()-sized batch (single grid step, 16-row tile) -------------
    batch = 2
    x = jax.random.normal(k_x1, (batch, num_inputs), jnp.float32)

    q_vals = dueling_dqn_forward(x, packed, num_actions)
    q_vals = jax.block_until_ready(q_vals)
    assert q_vals.shape == (batch, num_actions)

    q_packed_ref = reference_forward_packed(x, packed, num_actions)
    assert jnp.allclose(q_vals, q_packed_ref, atol=2e-2, rtol=2e-2), \
        "mismatch vs packed bf16 reference (small batch)"

    q_f32_ref = reference_forward_f32(x, params)
    assert jnp.max(jnp.abs(q_vals - q_f32_ref)) < 0.1, \
        "mismatch vs f32 PyTorch reference (small batch)"

    # --- non-multiple batch (exercises >=2 grid steps + padding path) --------
    batch2 = 300
    x2 = jax.random.normal(k_x2, (batch2, num_inputs), jnp.float32)

    q_vals2 = dueling_dqn_forward(x2, packed, num_actions)
    q_vals2 = jax.block_until_ready(q_vals2)
    assert q_vals2.shape == (batch2, num_actions)

    q_packed_ref2 = reference_forward_packed(x2, packed, num_actions)
    assert jnp.allclose(q_vals2, q_packed_ref2, atol=2e-2, rtol=2e-2), \
        "mismatch vs packed bf16 reference (tiled batch)"

    q_f32_ref2 = reference_forward_f32(x2, params)
    assert jnp.max(jnp.abs(q_vals2 - q_f32_ref2)) < 0.1, \
        "mismatch vs f32 PyTorch reference (tiled batch)"

    # Padded fast path sanity check (preferred consumption: no slice at all).
    q_pad = jax.block_until_ready(dueling_dqn_forward_padded(x2, packed))
    assert q_pad.dtype == jnp.bfloat16 and q_pad.shape[1] == HEAD_WIDTH

    print("KERNEL_OK")
</pallas_src>

<mosaic_0001>
module attributes {stable_mosaic.version = 11 : i64} {
  func.func @dueling_dqn_kernel(%arg0: i32, %arg1: memref<16x32xf32, #tpu.memory_space<vmem>>, %arg2: memref<32x128xbf16, #tpu.memory_space<vmem>>, %arg3: memref<1x128xf32, #tpu.memory_space<vmem>>, %arg4: memref<128x128xbf16, #tpu.memory_space<vmem>>, %arg5: memref<1x128xf32, #tpu.memory_space<vmem>>, %arg6: memref<128x128xbf16, #tpu.memory_space<vmem>>, %arg7: memref<1x128xf32, #tpu.memory_space<vmem>>, %arg8: memref<128x128xbf16, #tpu.memory_space<vmem>>, %arg9: memref<1x128xf32, #tpu.memory_space<vmem>>, %arg10: memref<16x128xbf16, #tpu.memory_space<vmem>>) attributes {dimension_semantics = [#tpu.dimension_semantics<parallel>], iteration_bounds = array<i64: 1>, scalar_prefetch = 0 : i64, scratch_operands = 0 : i64, tpu.core_type = #tpu.core_type<tc>, window_params = [{transform_indices = @transform_0, window_bounds = array<i64: 16, 32>}, {pipeline_mode = #tpu.pipeline_mode<synchronous>, transform_indices = @transform_1, window_bounds = array<i64: 32, 128>}, {pipeline_mode = #tpu.pipeline_mode<synchronous>, transform_indices = @transform_2, window_bounds = array<i64: 1, 128>}, {pipeline_mode = #tpu.pipeline_mode<synchronous>, transform_indices = @transform_3, window_bounds = array<i64: 128, 128>}, {pipeline_mode = #tpu.pipeline_mode<synchronous>, transform_indices = @transform_4, window_bounds = array<i64: 1, 128>}, {pipeline_mode = #tpu.pipeline_mode<synchronous>, transform_indices = @transform_5, window_bounds = array<i64: 128, 128>}, {pipeline_mode = #tpu.pipeline_mode<synchronous>, transform_indices = @transform_6, window_bounds = array<i64: 1, 128>}, {pipeline_mode = #tpu.pipeline_mode<synchronous>, transform_indices = @transform_7, window_bounds = array<i64: 128, 128>}, {pipeline_mode = #tpu.pipeline_mode<synchronous>, transform_indices = @transform_8, window_bounds = array<i64: 1, 128>}, {transform_indices = @transform_9, window_bounds = array<i64: 16, 128>}]} {
    %c0 = arith.constant 0 : index
    %c0_0 = arith.constant 0 : index
    %0 = vector.load %arg1[%c0, %c0_0] : memref<16x32xf32, #tpu.memory_space<vmem>>, vector<16x32xf32>
    %1 = arith.truncf %0 : vector<16x32xf32> to vector<16x32xbf16>
    %c0_1 = arith.constant 0 : index
    %c0_2 = arith.constant 0 : index
    %2 = vector.load %arg2[%c0_1, %c0_2] : memref<32x128xbf16, #tpu.memory_space<vmem>>, vector<32x128xbf16>
    %cst = arith.constant dense<0.000000e+00> : vector<16x128xf32>
    %3 = tpu.matmul %1, %2, %cst {dimension_numbers = #tpu.dot_dimension_numbers<[1], [0], [0], [1], [0, 0, 1, 1], [], []>} : vector<16x32xbf16>, vector<32x128xbf16>, vector<16x128xf32> -> vector<16x128xf32>
    %c0_3 = arith.constant 0 : index
    %c0_4 = arith.constant 0 : index
    %4 = vector.load %arg3[%c0_3, %c0_4] : memref<1x128xf32, #tpu.memory_space<vmem>>, vector<1x128xf32>
    %5 = vector.broadcast %4 : vector<1x128xf32> to vector<16x128xf32>
    %6 = arith.addf %3, %5 : vector<16x128xf32>
    %cst_5 = arith.constant 0.000000e+00 : f32
    %7 = vector.broadcast %cst_5 : f32 to vector<16x128xf32>
    %8 = arith.maximumf %6, %7 : vector<16x128xf32>
    %9 = arith.truncf %8 : vector<16x128xf32> to vector<16x128xbf16>
    %c0_6 = arith.constant 0 : index
    %c0_7 = arith.constant 0 : index
    %10 = vector.load %arg4[%c0_6, %c0_7] : memref<128x128xbf16, #tpu.memory_space<vmem>>, vector<128x128xbf16>
    %cst_8 = arith.constant dense<0.000000e+00> : vector<16x128xf32>
    %11 = tpu.matmul %9, %10, %cst_8 {dimension_numbers = #tpu.dot_dimension_numbers<[1], [0], [0], [1], [0, 0, 1, 1], [], []>} : vector<16x128xbf16>, vector<128x128xbf16>, vector<16x128xf32> -> vector<16x128xf32>
    %c0_9 = arith.constant 0 : index
    %c0_10 = arith.constant 0 : index
    %12 = vector.load %arg5[%c0_9, %c0_10] : memref<1x128xf32, #tpu.memory_space<vmem>>, vector<1x128xf32>
    %13 = vector.broadcast %12 : vector<1x128xf32> to vector<16x128xf32>
    %14 = arith.addf %11, %13 : vector<16x128xf32>
    %cst_11 = arith.constant 0.000000e+00 : f32
    %15 = vector.broadcast %cst_11 : f32 to vector<16x128xf32>
    %16 = arith.maximumf %14, %15 : vector<16x128xf32>
    %17 = arith.truncf %16 : vector<16x128xf32> to vector<16x128xbf16>
    %c0_12 = arith.constant 0 : index
    %c0_13 = arith.constant 0 : index
    %18 = vector.load %arg6[%c0_12, %c0_13] : memref<128x128xbf16, #tpu.memory_space<vmem>>, vector<128x128xbf16>
    %cst_14 = arith.constant dense<0.000000e+00> : vector<16x128xf32>
    %19 = tpu.matmul %17, %18, %cst_14 {dimension_numbers = #tpu.dot_dimension_numbers<[1], [0], [0], [1], [0, 0, 1, 1], [], []>} : vector<16x128xbf16>, vector<128x128xbf16>, vector<16x128xf32> -> vector<16x128xf32>
    %c0_15 = arith.constant 0 : index
    %c0_16 = arith.constant 0 : index
    %20 = vector.load %arg7[%c0_15, %c0_16] : memref<1x128xf32, #tpu.memory_space<vmem>>, vector<1x128xf32>
    %21 = vector.broadcast %20 : vector<1x128xf32> to vector<16x128xf32>
    %22 = arith.addf %19, %21 : vector<16x128xf32>
    %cst_17 = arith.constant 0.000000e+00 : f32
    %23 = vector.broadcast %cst_17 : f32 to vector<16x128xf32>
    %24 = arith.maximumf %22, %23 : vector<16x128xf32>
    %25 = arith.truncf %24 : vector<16x128xf32> to vector<16x128xbf16>
    %c0_18 = arith.constant 0 : index
    %c0_19 = arith.constant 0 : index
    %26 = vector.load %arg8[%c0_18, %c0_19] : memref<128x128xbf16, #tpu.memory_space<vmem>>, vector<128x128xbf16>
    %cst_20 = arith.constant dense<0.000000e+00> : vector<16x128xf32>
    %27 = tpu.matmul %25, %26, %cst_20 {dimension_numbers = #tpu.dot_dimension_numbers<[1], [0], [0], [1], [0, 0, 1, 1], [], []>} : vector<16x128xbf16>, vector<128x128xbf16>, vector<16x128xf32> -> vector<16x128xf32>
    %c0_21 = arith.constant 0 : index
    %c0_22 = arith.constant 0 : index
    %28 = vector.load %arg9[%c0_21, %c0_22] : memref<1x128xf32, #tpu.memory_space<vmem>>, vector<1x128xf32>
    %29 = vector.broadcast %28 : vector<1x128xf32> to vector<16x128xf32>
    %30 = arith.addf %27, %29 : vector<16x128xf32>
    %31 = arith.truncf %30 : vector<16x128xf32> to vector<16x128xbf16>
    %c0_23 = arith.constant 0 : index
    %c0_24 = arith.constant 0 : index
    %32 = vector.load %arg10[%c0_23, %c0_24] : memref<16x128xbf16, #tpu.memory_space<vmem>>, vector<16x128xbf16>
    tpu.vector_store %arg10[%c0_23, %c0_24], %31 {strides = array<i32>} : memref<16x128xbf16, #tpu.memory_space<vmem>>, vector<16x128xbf16>,
    return
  }
  func.func @transform_0(%arg0: i32) -> (i32, i32) {
    %c0_i32 = arith.constant 0 : i32
    %c0_i32_0 = arith.constant 0 : i32
    return %arg0, %c0_i32 : i32, i32
  }
  func.func @transform_1(%arg0: i32) -> (i32, i32) {
    %c0_i32 = arith.constant 0 : i32
    %c0_i32_0 = arith.constant 0 : i32
    %c0_i32_1 = arith.constant 0 : i32
    return %c0_i32, %c0_i32_0 : i32, i32
  }
  func.func @transform_2(%arg0: i32) -> (i32, i32) {
    %c0_i32 = arith.constant 0 : i32
    %c0_i32_0 = arith.constant 0 : i32
    %c0_i32_1 = arith.constant 0 : i32
    return %c0_i32, %c0_i32_0 : i32, i32
  }
  func.func @transform_3(%arg0: i32) -> (i32, i32) {
    %c0_i32 = arith.constant 0 : i32
    %c0_i32_0 = arith.constant 0 : i32
    %c0_i32_1 = arith.constant 0 : i32
    return %c0_i32, %c0_i32_0 : i32, i32
  }
  func.func @transform_4(%arg0: i32) -> (i32, i32) {
    %c0_i32 = arith.constant 0 : i32
    %c0_i32_0 = arith.constant 0 : i32
    %c0_i32_1 = arith.constant 0 : i32
    return %c0_i32, %c0_i32_0 : i32, i32
  }
  func.func @transform_5(%arg0: i32) -> (i32, i32) {
    %c0_i32 = arith.constant 0 : i32
    %c0_i32_0 = arith.constant 0 : i32
    %c0_i32_1 = arith.constant 0 : i32
    return %c0_i32, %c0_i32_0 : i32, i32
  }
  func.func @transform_6(%arg0: i32) -> (i32, i32) {
    %c0_i32 = arith.constant 0 : i32
    %c0_i32_0 = arith.constant 0 : i32
    %c0_i32_1 = arith.constant 0 : i32
    return %c0_i32, %c0_i32_0 : i32, i32
  }
  func.func @transform_7(%arg0: i32) -> (i32, i32) {
    %c0_i32 = arith.constant 0 : i32
    %c0_i32_0 = arith.constant 0 : i32
    %c0_i32_1 = arith.constant 0 : i32
    return %c0_i32, %c0_i32_0 : i32, i32
  }
  func.func @transform_8(%arg0: i32) -> (i32, i32) {
    %c0_i32 = arith.constant 0 : i32
    %c0_i32_0 = arith.constant 0 : i32
    %c0_i32_1 = arith.constant 0 : i32
    return %c0_i32, %c0_i32_0 : i32, i32
  }
  func.func @transform_9(%arg0: i32) -> (i32, i32) {
    %c0_i32 = arith.constant 0 : i32
    %c0_i32_0 = arith.constant 0 : i32
    return %arg0, %c0_i32 : i32, i32
  }
}

</mosaic_0001>

<bundles_post_ra>
// kernel: dueling_dqn_forward.1
= control target key start
LH: loop header
LB: loop body
LE: loop exit
PB: predicated region body
PF: predicated region fallthrough
CT: control target
= control target key end

     0   :  { %14 = vsyncpa [#allocation3], 0  ;;  %s868_s0 = inlined_call_operand.vmem [shape: f32[16,32], index: 0, kind: input, shape index: {}]   ;;  %s869_s1 = inlined_call_operand.vmem [shape: bf16[32,128], index: 1, kind: input, shape index: {}]   ;;  %s870_s2 = inlined_call_operand.vmem [shape: f32[1,128], index: 2, kind: input, shape index: {}]   ;;  %s871_s3 = inlined_call_operand.hbm [shape: bf16[128,128], index: 3, kind: input, shape index: {}]   ;;  %s872_s4 = inlined_call_operand.vmem [shape: f32[1,128], index: 4, kind: input, shape index: {}]   ;;  %s873_s5 = inlined_call_operand.hbm [shape: bf16[128,128], index: 5, kind: input, shape index: {}]   ;;  %s874_s6 = inlined_call_operand.vmem [shape: f32[1,128], index: 6, kind: input, shape index: {}]   ;;  %s875_s7 = inlined_call_operand.hbm [shape: bf16[128,128], index: 7, kind: input, shape index: {}]   ;;  %s876_s8 = inlined_call_operand.vmem [shape: f32[1,128], index: 8, kind: input, shape index: {}]   ;;  %s877_s9 = inlined_call_operand.vmem [shape: bf16[16,128], index: 9, kind: output, shape index: {}]  }
   0x1   :  { %15 = vsyncpa [#allocation5], 0  ;;  %s741_s30 = smov [#allocation4]   ;;  %s742_s11 = smov [#allocation2]  }
   0x2   :  { %s41_s10 = sshll.u32 %s741_s30, 4  ;;  %s27_s12 = sshll.u32 %s742_s11, 4  ;;  %s42_s10 = int_to_ptr.vmem [resolvable:$true] %s41_s10  ;;  %s28_s12 = int_to_ptr.vmem [resolvable:$true] %s27_s12 }
   0x3   :  { %s685_s13 = scalar_lea.vmem %s42_s10, 1024  ;;  %p690_p1 = scmp.lt.s32.totalorder %s42_s10, %s42_s10 }
   0x4   :  { %p686_p0 = scmp.ne.s32.totalorder %s42_s10, %s685_s13  ;;  %p691_p2 = scmp.lt.s32.totalorder %s685_s13, %s685_s13 }
   0x6   :  { %p692_p3 = por %p691_p2, %p690_p1 }
   0x8   :  { %p693_p4 = pnand %p692_p3, %p686_p0 }
   0xa   :  { %696 = shalt.err (!%p693_p4)
}
   0xb   :  { %s743_s14 = smov 64   ;;  %s744_s15 = smov 4  }
   0xc   :  { %47 = dma.hbm_to_vmem [thread:$0]  %s873_s5, 1024, %s42_s10, [#allocation5], %s743_s14, %s743_s14, %s744_s15  }
   0xd   :  { %s705_s18 = scalar_lea.vmem %s28_s12, 1024  ;;  %p710_p6 = scmp.lt.s32.totalorder %s28_s12, %s28_s12 }
   0xe   :  { %p706_p5 = scmp.ne.s32.totalorder %s28_s12, %s705_s18  ;;  %p711_p7 = scmp.lt.s32.totalorder %s705_s18, %s705_s18 }
  0x10   :  { %p712_p8 = por %p711_p7, %p710_p6 }
  0x12   :  { %p713_p9 = pnand %p712_p8, %p706_p5 }
  0x14   :  { %716 = shalt.err (!%p713_p9)
}
  0x15   :  { %33 = dma.hbm_to_vmem [thread:$0]  %s871_s3, 1024, %s28_s12, [#allocation3], %s743_s14, %s743_s14, %s744_s15  }
  0x16   :  { %s745_s21 = smov [#allocation6]  }
  0x17   :  { %s55_s22 = sshll.u32 %s745_s21, 4  ;;  %s56_s22 = int_to_ptr.vmem [resolvable:$true] %s55_s22 }
  0x18   :  { %s725_s23 = scalar_lea.vmem %s56_s22, 1024  ;;  %p730_p11 = scmp.lt.s32.totalorder %s56_s22, %s56_s22 }
  0x19   :  { %p726_p10 = scmp.ne.s32.totalorder %s56_s22, %s725_s23  ;;  %p731_p12 = scmp.lt.s32.totalorder %s725_s23, %s725_s23 }
  0x1b   :  { %p732_p13 = por %p731_p12, %p730_p11 }
  0x1d   :  { %p733_p0 = pnand %p732_p13, %p726_p10 }
  0x1f   :  { %736 = shalt.err (!%p733_p0)
}
  0x20   :  { %61 = dma.hbm_to_vmem [thread:$0]  %s875_s7, 1024, %s56_s22, [#allocation5], %s743_s14, %s743_s14, %s744_s15  }
  0x21   :  { %737 = dma.done.wait [#allocation3], 1024  }
  0x22   :  { %738 = vsyncadd [#allocation3], 4294966272 }
  0x23   :  { %739 = dma.done.wait [#allocation5], 2048  }
  0x24   :  { %740 = vsyncadd [#allocation5], 4294965248  ;;  %v746_v0 = vmov 0.0   ;;  %vm747_vm0 = vmmov 0   ;;  %v651_v1 = vld [vmem:[%s869_s1 + $0x8] sm:$0xff]   ;;  %v652_v2 = vld [vmem:[%s869_s1] sm:$0xff]  }
  0x25   :  { %576 = vmatprep.subr.bf16.mxu0 %v746_v0  ;;  %580 = vmatprep.mubr.msk.bf16.mxu0 %vm747_vm0, %v746_v0  ;;  %v74_v3 = vld [vmem:[%s868_s0] sm:$0xff]  ;;  %v75_v4 = vld [vmem:[%s868_s0 + $0x8] sm:$0xff]  ;;  %v653_v5 = vld [vmem:[#allocation2 + $0x38] sm:$0xff]   ;;  %vm100_vm1 = vcmask 261120  }
  0x26   :  { %584 = vmatprep.subr.bf16.mxu1 %v746_v0  ;;  %600 = vmatprep.mubr.msk.bf16.mxu1 %vm747_vm0, %v746_v0  ;;  %v76_v6 = vpack.c.bf16 %v75_v4, %v74_v3  ;;  %v654_v7 = vld [vmem:[#allocation2 + $0x30] sm:$0xff]   ;;  %v655_v8 = vld [vmem:[#allocation2 + $0x28] sm:$0xff]   ;;  %v656_v9 = vld [vmem:[#allocation2 + $0x20] sm:$0xff]  }
  0x27   :  { %577 = vmatpush3.bf16.msra.mxu0 %v651_v1  ;;  %585 = vmatpush3.bf16.msra.mxu1 %v653_v5  ;;  %v657_v10 = vld [vmem:[#allocation2 + $0x18] sm:$0xff]   ;;  %v658_v11 = vld [vmem:[#allocation2 + $0x10] sm:$0xff]   ;;  %v659_v12 = vld [vmem:[#allocation2 + $0x8] sm:$0xff]  }
  0x28   :  { %578 = vmatprep.subr.bf16.mxu0 %v746_v0  ;;  %586 = vmatprep.subr.bf16.mxu1 %v746_v0  ;;  %v660_v13 = vld [vmem:[#allocation2] sm:$0xff]   ;;  %v661_v14 = vld [vmem:[#allocation4 + $0x38] sm:$0xff]   ;;  %v662_v15 = vld [vmem:[#allocation4 + $0x30] sm:$0xff]  }
  0x29   :  { %v663_v16 = vld [vmem:[#allocation4 + $0x28] sm:$0xff]   ;;  %v664_v17 = vld [vmem:[#allocation4 + $0x20] sm:$0xff]   ;;  %v665_v18 = vld [vmem:[#allocation4 + $0x18] sm:$0xff]  }
  0x2a   :  { %v506_v19 = vld [vmem:[%s870_s2] ss:$0 sm:$0xff]  ;;  %v666_v29 = vld [vmem:[#allocation4 + $0x10] sm:$0xff]   ;;  %v667_v30 = vld [vmem:[#allocation4 + $0x8] sm:$0xff]  }
  0x2b   :  { %579 = vmatpush3.bf16.msra.mxu0 %v652_v2  ;;  %587 = vmatpush3.bf16.msra.mxu1 %v654_v7  ;;  %v668_v31 = vld [vmem:[#allocation4] sm:$0xff]   ;;  %v669_v32 = vld [vmem:[#allocation6 + $0x38] sm:$0xff]   ;;  %v670_v33 = vld [vmem:[#allocation6 + $0x30] sm:$0xff]  }
  0x2c   :  { %604 = vmatprep.subr.bf16.mxu0 %v746_v0  ;;  %588 = vmatprep.subr.bf16.mxu1 %v746_v0  ;;  %v671_v34 = vld [vmem:[#allocation6 + $0x28] sm:$0xff]   ;;  %v672_v35 = vld [vmem:[#allocation6 + $0x20] sm:$0xff]   ;;  %v673_v36 = vld [vmem:[#allocation6 + $0x18] sm:$0xff]  }
  0x2d   :  { %v510_v37 = vld [vmem:[%s872_s4] ss:$0 sm:$0xff]  ;;  %v674_v47 = vld [vmem:[#allocation6 + $0x10] sm:$0xff]   ;;  %v675_v48 = vld [vmem:[#allocation6 + $0x8] sm:$0xff]  }
  0x2e   :  { %581 = vmatmul.mubr.msk.bf16.vlgmr.msra.gmra.mxu0 %vm100_vm1, %v76_v6  ;;  %v676_v49 = vld [vmem:[#allocation6] sm:$0xff]  }
  0x2f   :  { %620 = vmatprep.mubr.msk.bf16.mxu0 %vm747_vm0, %v746_v0  ;;  %589 = vmatpush3.bf16.msra.mxu1 %v655_v8  ;;  %v519_v50 = vld [vmem:[%s874_s6] ss:$0 sm:$0xff] }
  0x30   :  { %590 = vmatprep.subr.bf16.mxu1 %v746_v0  ;;  %605 = vmatpush3.bf16.msra.mxu0 %v661_v14  ;;  %v528_v61 = vld [vmem:[%s876_s8] ss:$0 sm:$0xff] }
  0x31   :  { %606 = vmatprep.subr.bf16.mxu0 %v746_v0 }
  0x33   :  { %591 = vmatpush3.bf16.msra.mxu1 %v656_v9 }
  0x34   :  { %592 = vmatprep.subr.bf16.mxu1 %v746_v0  ;;  %607 = vmatpush3.bf16.msra.mxu0 %v662_v15 }
  0x35   :  { %608 = vmatprep.subr.bf16.mxu0 %v746_v0 }
  0x37   :  { %593 = vmatpush3.bf16.msra.mxu1 %v657_v10 }
  0x38   :  { %594 = vmatprep.subr.bf16.mxu1 %v746_v0  ;;  %609 = vmatpush3.bf16.msra.mxu0 %v663_v16 }
  0x39   :  { %610 = vmatprep.subr.bf16.mxu0 %v746_v0 }
  0x3b   :  { %595 = vmatpush3.bf16.msra.mxu1 %v658_v11 }
  0x3c   :  { %596 = vmatprep.subr.bf16.mxu1 %v746_v0  ;;  %611 = vmatpush3.bf16.msra.mxu0 %v664_v17 }
  0x3d   :  { %612 = vmatprep.subr.bf16.mxu0 %v746_v0 }
  0x3f   :  { %597 = vmatpush3.bf16.msra.mxu1 %v659_v12 }
  0x40   :  { %598 = vmatprep.subr.bf16.mxu1 %v746_v0  ;;  %613 = vmatpush3.bf16.msra.mxu0 %v665_v18 }
  0x41   :  { %614 = vmatprep.subr.bf16.mxu0 %v746_v0 }
  0x43   :  { %599 = vmatpush3.bf16.msra.mxu1 %v660_v13 }
  0x44   :  { %624 = vmatprep.subr.bf16.mxu1 %v746_v0  ;;  %615 = vmatpush3.bf16.msra.mxu0 %v666_v29 }
  0x45   :  { %616 = vmatprep.subr.bf16.mxu0 %v746_v0 }
  0x48   :  { %617 = vmatpush3.bf16.msra.mxu0 %v667_v30 }
  0x49   :  { %618 = vmatprep.subr.bf16.mxu0 %v746_v0 }
  0x4c   :  { %619 = vmatpush3.bf16.msra.mxu0 %v668_v31 }
  0xee   :  { %v138_v20 = vpop.f32.mrf.mxu0 }
  0xef   :  { %v139_v22 = vadd.f32 %v506_v19, %v138_v20 }
  0xf0   :  { %v582_v21 = vpop.f32.mrf.mxu0 }
  0xf1   :  { %v145_v26 = vmax.f32 %v139_v22, 0.0 }
  0xf2   :  { %v141_v23 = vpop.f32.mrf.mxu0 }
  0xf3   :  { %v142_v24 = vadd.f32 %v506_v19, %v141_v23 }
  0xf4   :  { %v583_v25 = vpop.f32.mrf.mxu0 }
  0xf5   :  { %v146_v27 = vmax.f32 %v142_v24, 0.0 }
  0xf7   :  { %v147_v28 = vpack.c.bf16 %v146_v27, %v145_v26 }
  0xf9   :  { %601 = vmatmul.mubr.bf16.vlgmr.msra.gmra.mxu1 %v147_v28 }
  0xfa   :  { %640 = vmatprep.mubr.msk.bf16.mxu1 %vm747_vm0, %v746_v0  ;;  %625 = vmatpush3.bf16.msra.mxu1 %v669_v32 }
  0xfb   :  { %626 = vmatprep.subr.bf16.mxu1 %v746_v0 }
  0xfe   :  { %627 = vmatpush3.bf16.msra.mxu1 %v670_v33 }
  0xff   :  { %628 = vmatprep.subr.bf16.mxu1 %v746_v0 }
 0x102   :  { %629 = vmatpush3.bf16.msra.mxu1 %v671_v34 }
 0x103   :  { %630 = vmatprep.subr.bf16.mxu1 %v746_v0 }
 0x106   :  { %631 = vmatpush3.bf16.msra.mxu1 %v672_v35 }
 0x107   :  { %632 = vmatprep.subr.bf16.mxu1 %v746_v0 }
 0x10a   :  { %633 = vmatpush3.bf16.msra.mxu1 %v673_v36 }
 0x10b   :  { %634 = vmatprep.subr.bf16.mxu1 %v746_v0 }
 0x10e   :  { %635 = vmatpush3.bf16.msra.mxu1 %v674_v47 }
 0x10f   :  { %636 = vmatprep.subr.bf16.mxu1 %v746_v0 }
 0x112   :  { %637 = vmatpush3.bf16.msra.mxu1 %v675_v48 }
 0x113   :  { %638 = vmatprep.subr.bf16.mxu1 %v746_v0 }
 0x116   :  { %639 = vmatpush3.bf16.msra.mxu1 %v676_v49 }
 0x1b9   :  { %v253_v38 = vpop.f32.mrf.mxu1 }
 0x1ba   :  { %v254_v40 = vadd.f32 %v510_v37, %v253_v38 }
 0x1bb   :  { %v602_v39 = vpop.f32.mrf.mxu1 }
 0x1bc   :  { %v260_v44 = vmax.f32 %v254_v40, 0.0 }
 0x1bd   :  { %v256_v41 = vpop.f32.mrf.mxu1 }
 0x1be   :  { %v257_v42 = vadd.f32 %v510_v37, %v256_v41 }
 0x1bf   :  { %v603_v43 = vpop.f32.mrf.mxu1 }
 0x1c0   :  { %v261_v45 = vmax.f32 %v257_v42, 0.0 }
 0x1c2   :  { %v262_v46 = vpack.c.bf16 %v261_v45, %v260_v44 }
 0x1c4   :  { %621 = vmatmul.mubr.bf16.vlgmr.msra.gmra.mxu0 %v262_v46 }
 0x284   :  { %v368_v51 = vpop.f32.mrf.mxu0 }
 0x285   :  { %v369_v53 = vadd.f32 %v519_v50, %v368_v51 }
 0x286   :  { %v622_v52 = vpop.f32.mrf.mxu0 }
 0x287   :  { %v375_v57 = vmax.f32 %v369_v53, 0.0 }
 0x288   :  { %v371_v54 = vpop.f32.mrf.mxu0 }
 0x289   :  { %v372_v55 = vadd.f32 %v519_v50, %v371_v54 }
 0x28a   :  { %v623_v56 = vpop.f32.mrf.mxu0 }
 0x28b   :  { %v376_v58 = vmax.f32 %v372_v55, 0.0 }
 0x28d   :  { %v377_v59 = vpack.c.bf16 %v376_v58, %v375_v57 }
 0x28f   :  { %641 = vmatmul.mubr.bf16.vlgmr.msra.gmra.mxu1 %v377_v59 }
 0x34f   :  { %v483_v60 = vpop.f32.mrf.mxu1 }
 0x350   :  { %v484_v0 = vadd.f32 %v528_v61, %v483_v60 }
 0x351   :  { %v642_v62 = vpop.f32.mrf.mxu1 }
 0x353   :  { %v486_v63 = vpop.f32.mrf.mxu1 }
 0x354   :  { %v487_v1 = vadd.f32 %v528_v61, %v486_v63 }
 0x355   :  { %v643_v2 = vpop.f32.mrf.mxu1 }
 0x356   :  { %v544_v3 = vpack.c.bf16 %v487_v1, %v484_v0 }
 0x358   :  { %545 = vst [vmem:[%s877_s9] sm:$0xff] %v544_v3  }
 0x359   :  { %504 = vsyncpa [#allocation3], 1 }
 0x35a   :  { %505 = vsyncpa [#allocation5], 1 }

</bundles_post_ra>
